<compile_context>
chip_gen: v7x
topology: tpu7x:2x2x1
jax: 0.10.0
libtpu: 0.0.40
codegen_flags: <defaults>
</compile_context>

<pallas_src>
import jax
import jax.numpy as jnp
from jax.experimental import pallas as pl
from jax.experimental.pallas import tpu as pltpu

# ----------------------------- config (cfg.*) ------------------------------
BATCH = 8
INPUT_DIM = 32       # cfg.input_dim
RES_DIM = 32         # cfg.res_dim
RES_NUM = 2          # cfg.res_num
ACTION_NUM = 32      # cfg.action_num
CONTEXT_DIM = 16     # cfg.context_dim
ACTION_MAP_DIM = 32  # cfg.action_map_dim
GATE_DIM = 32        # cfg.gate_dim
TEMPERATURE = 0.8    # whole_cfg.model.temperature
NEG_INF = -1000000000.0

OUT_LANES = 128                       # lane-dense output slab width
assert ACTION_NUM + GATE_DIM < OUT_LANES
assert ACTION_NUM & (ACTION_NUM - 1) == 0   # index packing uses log2(ACTION_NUM) bits


# ------------------------------ fused kernel --------------------------------
def _make_fused_kernel(sample: bool, res_num: int):
    i_af = 1 + 2 * res_num            # action_fc out weight index in the slab
    i_tab = i_af + 1                  # precomputed one-hot -> embedding table
    i_o1 = i_af + 2                   # glu1 output weight
    i_o2 = i_af + 3                   # glu2 output weight
    o_g1 = RES_DIM                    # gate lane offsets in the merged gate GEMM
    o_g2 = RES_DIM + ACTION_MAP_DIM
    o_end = o_g2 + INPUT_DIM
    pad_lanes = OUT_LANES - ACTION_NUM - GATE_DIM
    idx_mask = ACTION_NUM - 1         # low bits holding (ACTION_NUM-1 - idx)

    def kernel(ctrl_ref, lstm_ref, ctx_ref, mask_ref,
               w_sq_ref, b_sq_ref, w_gate_ref, b_gate_ref, b_out_ref,
               out_ref):
        f32 = jnp.float32
        bf16 = jnp.bfloat16
        lstm = lstm_ref[...]                       # (B, INPUT_DIM)   bf16
        ctx = ctx_ref[...]                         # (B, CONTEXT_DIM) bf16
        batch = lstm.shape[0]

        def mm(a, w):                              # bf16 MXU, f32 accumulate
            return jnp.dot(a.astype(bf16), w, preferred_element_type=f32)

        # ---- all three context GLU gates in one MXU push --------------------
        gates = jax.nn.sigmoid(mm(ctx, w_gate_ref[...]) + b_gate_ref[...])  # (B,96)
        gate_af = gates[:, 0:o_g1]                 # action_fc gate
        g1 = gates[:, o_g1:o_g2]                   # glu1 gate
        g2 = gates[:, o_g2:o_end]                  # glu2 gate

        # ---- glu2 branch: independent of the sampled action, so it is issued
        #      up front and overlaps the residual chain.  The combined output
        #      bias (b_o1 + b_o2) is folded in here.
        emb2 = mm(g2 * lstm, w_sq_ref[i_o2]) + b_out_ref[...]     # (B, GATE_DIM)

        # ---- project (fc + ReLU) + ResFCBlocks (norm_type=None) -------------
        x = jnp.maximum(mm(lstm, w_sq_ref[0]) + b_sq_ref[0], 0.0)
        for r in range(res_num):
            h = jnp.maximum(mm(x, w_sq_ref[1 + 2 * r]) + b_sq_ref[1 + 2 * r], 0.0)
            h = mm(h, w_sq_ref[2 + 2 * r]) + b_sq_ref[2 + 2 * r]
            x = jnp.maximum(h + x, 0.0)

        # ---- action_fc output (1/temperature pre-folded) + mask fill --------
        logits = mm(gate_af * x, w_sq_ref[i_af]) + b_sq_ref[i_af]
        logits = jnp.where(mask_ref[...] != 0, logits, NEG_INF)

        # ---- action selection -----------------------------------------------
        iota_i = jax.lax.broadcasted_iota(jnp.int32, (batch, ACTION_NUM), 1)
        if sample:
            # Gumbel-max == multinomial(softmax(logits)); noise from wrapper.
            z = logits + ctrl_ref[...]
            # Single cross-lane reduction: build an order-preserving int32 key
            # of z and pack (ACTION_NUM-1 - idx) into its low bits so ties
            # resolve to the smallest index; one max-reduce, then unpack.
            zi = jax.lax.bitcast_convert_type(z, jnp.int32)
            key = zi ^ ((zi >> 31) & jnp.int32(0x7FFFFFFF))      # monotone in z
            key = (key & jnp.int32(~idx_mask)) | (jnp.int32(idx_mask) - iota_i)
            key_max = jnp.max(key, axis=-1, keepdims=True)       # (B,1)
            idx_i = jnp.int32(idx_mask) - (key_max & jnp.int32(idx_mask))
        else:
            # TODO(synk): ids >= ACTION_NUM silently give an all-zero one-hot
            # instead of raising like torch.nn.functional.one_hot.
            idx_i = ctrl_ref[...]                                # (B,1) int32

        one_hot = (iota_i == idx_i).astype(bf16)                 # (B, ACTION_NUM)

        # ---- embedding tail: table lookup via matmul + glu1 output ----------
        e = mm(one_hot, w_sq_ref[i_tab])          # = relu(oh@W1+b1)@W2+b2 (prefolded)
        embedding = mm(g1 * e, w_sq_ref[i_o1]) + emb2            # (B, GATE_DIM)

        # ---- single lane-dense store: [logits | embedding | action-id pad] --
        pad = jnp.broadcast_to(idx_i.astype(f32), (batch, pad_lanes))
        out_ref[...] = jnp.concatenate([logits, embedding, pad], axis=-1)

    return kernel


# --------------------------------- wrapper -----------------------------------
def _cost_estimate(batch):
    # 9 (32x32) GEMMs + the merged (16x96) gate GEMM, per row.
    flops = 2 * batch * (9 * RES_DIM * RES_DIM + CONTEXT_DIM * 3 * RES_DIM)
    transcendentals = batch * 3 * RES_DIM          # sigmoids
    param_bytes = (9 * 32 * 32 * 2 + 6 * 32 * 4 + CONTEXT_DIM * 96 * 2
                   + 96 * 4 + 32 * 4)
    act_bytes = batch * (INPUT_DIM * 2 + CONTEXT_DIM * 2 + ACTION_NUM * 4
                         + ACTION_NUM * 4 + OUT_LANES * 4)
    return pl.CostEstimate(flops=flops, transcendentals=transcendentals,
                           bytes_accessed=param_bytes + act_bytes)


@jax.jit
def action_type_head_forward(lstm_output, scalar_context, mask, params, rng_key,
                             action_type=None):
    """Returns (logits, action_type, embedding) — same as the PyTorch forward."""
    batch = lstm_output.shape[0]
    sample = action_type is None

    lstm_bf = lstm_output.astype(jnp.bfloat16)     # cast once (not per-mm)
    ctx_bf = scalar_context.astype(jnp.bfloat16)
    mask_i32 = mask.astype(jnp.int32)

    if sample:
        ctrl = jax.random.gumbel(rng_key, (batch, ACTION_NUM), jnp.float32)
    else:
        ctrl = jnp.asarray(action_type, jnp.int32).reshape(batch, 1)

    vmem = pl.BlockSpec(memory_space=pltpu.MemorySpace.VMEM)
    slab = pl.pallas_call(
        _make_fused_kernel(sample=sample, res_num=RES_NUM),
        out_shape=jax.ShapeDtypeStruct((batch, OUT_LANES), jnp.float32),
        in_specs=[vmem] * 9,
        out_specs=vmem,
        cost_estimate=_cost_estimate(batch),
    )(ctrl, lstm_bf, ctx_bf, mask_i32,
      params["w_sq"], params["b_sq"], params["w_gate"], params["b_gate"],
      params["b_out"])

    logits = slab[:, :ACTION_NUM]
    embedding = slab[:, ACTION_NUM:ACTION_NUM + GATE_DIM]
    action_out = slab[:, ACTION_NUM + GATE_DIM].astype(jnp.int32)
    return logits, action_out, embedding


# --------------------------- deterministic params ----------------------------
def _linear(key, fan_in, fan_out):
    kw, kb = jax.random.split(key)
    lim = 1.0 / (fan_in ** 0.5)
    w = jax.random.uniform(kw, (fan_in, fan_out), jnp.float32, -lim, lim)
    b = jax.random.uniform(kb, (1, fan_out), jnp.float32, -lim, lim)
    return w, b


def init_params(key):
    keys = iter(jax.random.split(key, 16))
    raw = {"proj": _linear(next(keys), INPUT_DIM, RES_DIM), "res": []}
    for _ in range(RES_NUM):
        w1, b1 = _linear(next(keys), RES_DIM, RES_DIM)
        w2, b2 = _linear(next(keys), RES_DIM, RES_DIM)
        raw["res"].append((w1, b1, w2, b2))
    raw["af_gate"] = _linear(next(keys), CONTEXT_DIM, RES_DIM)
    raw["af_out"] = _linear(next(keys), RES_DIM, ACTION_NUM)
    raw["amap1"] = _linear(next(keys), ACTION_NUM, ACTION_MAP_DIM)
    raw["amap2"] = _linear(next(keys), ACTION_MAP_DIM, ACTION_MAP_DIM)
    raw["g1_gate"] = _linear(next(keys), CONTEXT_DIM, ACTION_MAP_DIM)
    raw["g1_out"] = _linear(next(keys), ACTION_MAP_DIM, GATE_DIM)
    raw["g2_gate"] = _linear(next(keys), CONTEXT_DIM, INPUT_DIM)
    raw["g2_out"] = _linear(next(keys), INPUT_DIM, GATE_DIM)

    # ---- pack into kernel slabs (all square weights are (32,32) here) -------
    inv_t = jnp.float32(1.0 / TEMPERATURE)
    # one-hot @ W1 + b1 -> ReLU -> @ W2 + b2  collapses to a row-lookup table.
    e_table = (jnp.maximum(raw["amap1"][0] + raw["amap1"][1], 0.0)
               @ raw["amap2"][0] + raw["amap2"][1])      # (ACTION_NUM, MAP_DIM)

    sq_w, sq_b = [raw["proj"][0]], [raw["proj"][1]]
    for w1, b1, w2, b2 in raw["res"]:
        sq_w += [w1, w2]
        sq_b += [b1, b2]
    sq_w += [raw["af_out"][0] * inv_t, e_table, raw["g1_out"][0], raw["g2_out"][0]]
    sq_b += [raw["af_out"][1] * inv_t]

    packed = {
        "w_sq": jnp.stack(sq_w).astype(jnp.bfloat16),                   # (9,32,32)
        "b_sq": jnp.stack(sq_b),                                        # (6,1,32)
        "w_gate": jnp.concatenate(
            [raw["af_gate"][0], raw["g1_gate"][0], raw["g2_gate"][0]],
            axis=1).astype(jnp.bfloat16),                               # (16,96)
        "b_gate": jnp.concatenate(
            [raw["af_gate"][1], raw["g1_gate"][1], raw["g2_gate"][1]], axis=1),
        "b_out": raw["g1_out"][1] + raw["g2_out"][1],                   # (1,32)
    }
    return packed, raw


# ------------------------- pure-JAX f32 reference ----------------------------
def _reference_forward(lstm, ctx, mask, raw, action):
    relu = lambda v: jnp.maximum(v, 0.0)
    x = relu(lstm @ raw["proj"][0] + raw["proj"][1])
    for w1, b1, w2, b2 in raw["res"]:
        h = relu(x @ w1 + b1)
        h = h @ w2 + b2
        x = relu(h + x)
    gate = jax.nn.sigmoid(ctx @ raw["af_gate"][0] + raw["af_gate"][1])
    logits = ((gate * x) @ raw["af_out"][0] + raw["af_out"][1]) / TEMPERATURE
    logits = jnp.where(mask, logits, NEG_INF)
    onehot = jax.nn.one_hot(action, ACTION_NUM, dtype=jnp.float32)
    e = relu(onehot @ raw["amap1"][0] + raw["amap1"][1])
    e = e @ raw["amap2"][0] + raw["amap2"][1]
    g1 = jax.nn.sigmoid(ctx @ raw["g1_gate"][0] + raw["g1_gate"][1])
    e1 = (g1 * e) @ raw["g1_out"][0] + raw["g1_out"][1]
    g2 = jax.nn.sigmoid(ctx @ raw["g2_gate"][0] + raw["g2_gate"][1])
    e2 = (g2 * lstm) @ raw["g2_out"][0] + raw["g2_out"][1]
    return logits, e1 + e2


# ----------------------------------- main ------------------------------------
if __name__ == "__main__":
    root = jax.random.PRNGKey(0)
    k_param, k_lstm, k_ctx, k_mask, k_sample = jax.random.split(root, 5)

    packed, raw = init_params(k_param)
    lstm_output = jax.random.normal(k_lstm, (BATCH, INPUT_DIM), jnp.float32)
    scalar_context = jax.random.normal(k_ctx, (BATCH, CONTEXT_DIM), jnp.float32)
    mask = jax.random.bernoulli(k_mask, 0.7, (BATCH, ACTION_NUM))
    mask = mask.at[:, 0].set(True)      # guarantee at least one valid action/row

    # sampling path (action_type=None): in-kernel Gumbel-max categorical sample
    logits, action_type, embedding = action_type_head_forward(
        lstm_output, scalar_context, mask, packed, k_sample, action_type=None)
    jax.block_until_ready((logits, action_type, embedding))

    assert logits.shape == (BATCH, ACTION_NUM)
    assert action_type.shape == (BATCH,)
    assert embedding.shape == (BATCH, GATE_DIM)
    # sampled actions must respect the mask; masked logits are exactly -1e9
    assert bool(jnp.all(mask[jnp.arange(BATCH), action_type]))
    assert bool(jnp.all(jnp.where(mask, True, logits == NEG_INF)))

    # numerical check vs f32 reference (bf16 MXU tolerance)
    ref_logits, ref_emb = _reference_forward(
        lstm_output, scalar_context, mask, raw, action_type)
    assert float(jnp.max(jnp.abs(jnp.where(mask, logits - ref_logits, 0.0)))) < 0.25
    assert float(jnp.max(jnp.abs(embedding - ref_emb))) < 0.25

    # teacher-forced path (action_type given) must reproduce the same outputs
    logits2, action2, emb2 = action_type_head_forward(
        lstm_output, scalar_context, mask, packed, k_sample,
        action_type=action_type)
    jax.block_until_ready((logits2, action2, emb2))
    assert bool(jnp.all(action2 == action_type))
    assert bool(jnp.allclose(logits2, logits, rtol=1e-4, atol=1e-4))
    assert bool(jnp.allclose(emb2, embedding, rtol=1e-4, atol=1e-4))

    print("KERNEL_OK")
</pallas_src>

<mosaic_0001>
module attributes {stable_mosaic.version = 11 : i64} {
  func.func @kernel(%arg0: memref<8x32xf32, #tpu.memory_space<vmem>>, %arg1: memref<8x32xbf16, #tpu.memory_space<vmem>>, %arg2: memref<8x16xbf16, #tpu.memory_space<vmem>>, %arg3: memref<8x32xi32, #tpu.memory_space<vmem>>, %arg4: memref<9x32x32xbf16, #tpu.memory_space<vmem>>, %arg5: memref<6x1x32xf32, #tpu.memory_space<vmem>>, %arg6: memref<16x96xbf16, #tpu.memory_space<vmem>>, %arg7: memref<1x96xf32, #tpu.memory_space<vmem>>, %arg8: memref<1x32xf32, #tpu.memory_space<vmem>>, %arg9: memref<8x128xf32, #tpu.memory_space<vmem>>) attributes {dimension_semantics = [], scalar_prefetch = 0 : i64, scratch_operands = 0 : i64, tpu.core_type = #tpu.core_type<tc>} {
    %c0 = arith.constant 0 : index
    %c0_0 = arith.constant 0 : index
    %0 = vector.load %arg1[%c0, %c0_0] : memref<8x32xbf16, #tpu.memory_space<vmem>>, vector<8x32xbf16>
    %c0_1 = arith.constant 0 : index
    %c0_2 = arith.constant 0 : index
    %1 = vector.load %arg2[%c0_1, %c0_2] : memref<8x16xbf16, #tpu.memory_space<vmem>>, vector<8x16xbf16>
    %c0_3 = arith.constant 0 : index
    %c0_4 = arith.constant 0 : index
    %2 = vector.load %arg6[%c0_3, %c0_4] : memref<16x96xbf16, #tpu.memory_space<vmem>>, vector<16x96xbf16>
    %cst = arith.constant dense<0.000000e+00> : vector<8x96xf32>
    %3 = tpu.matmul %1, %2, %cst {dimension_numbers = #tpu.dot_dimension_numbers<[1], [0], [0], [1], [0, 0, 1, 1], [], []>} : vector<8x16xbf16>, vector<16x96xbf16>, vector<8x96xf32> -> vector<8x96xf32>
    %c0_5 = arith.constant 0 : index
    %c0_6 = arith.constant 0 : index
    %4 = vector.load %arg7[%c0_5, %c0_6] : memref<1x96xf32, #tpu.memory_space<vmem>>, vector<1x96xf32>
    %5 = vector.broadcast %4 : vector<1x96xf32> to vector<8x96xf32>
    %6 = arith.addf %3, %5 : vector<8x96xf32>
    %7 = arith.negf %6 : vector<8x96xf32>
    %8 = math.exp %7 : vector<8x96xf32>
    %cst_7 = arith.constant 1.000000e+00 : f32
    %9 = vector.broadcast %cst_7 : f32 to vector<8x96xf32>
    %10 = arith.addf %9, %8 : vector<8x96xf32>
    %11 = arith.divf %9, %10 : vector<8x96xf32>
    %12 = vector.extract_strided_slice %11 {offsets = [0, 0], sizes = [8, 32], strides = [1, 1]} : vector<8x96xf32> to vector<8x32xf32>
    %13 = vector.extract_strided_slice %11 {offsets = [0, 32], sizes = [8, 32], strides = [1, 1]} : vector<8x96xf32> to vector<8x32xf32>
    %14 = vector.extract_strided_slice %11 {offsets = [0, 64], sizes = [8, 32], strides = [1, 1]} : vector<8x96xf32> to vector<8x32xf32>
    %15 = arith.extf %0 : vector<8x32xbf16> to vector<8x32xf32>
    %16 = arith.mulf %14, %15 : vector<8x32xf32>
    %c8 = arith.constant 8 : index
    %c0_8 = arith.constant 0 : index
    %c0_9 = arith.constant 0 : index
    %17 = vector.load %arg4[%c8, %c0_8, %c0_9] : memref<9x32x32xbf16, #tpu.memory_space<vmem>>, vector<1x32x32xbf16>
    %18 = vector.shape_cast %17 : vector<1x32x32xbf16> to vector<32x32xbf16>
    %19 = arith.truncf %16 : vector<8x32xf32> to vector<8x32xbf16>
    %cst_10 = arith.constant dense<0.000000e+00> : vector<8x32xf32>
    %20 = tpu.matmul %19, %18, %cst_10 {dimension_numbers = #tpu.dot_dimension_numbers<[1], [0], [0], [1], [0, 0, 1, 1], [], []>} : vector<8x32xbf16>, vector<32x32xbf16>, vector<8x32xf32> -> vector<8x32xf32>
    %c0_11 = arith.constant 0 : index
    %c0_12 = arith.constant 0 : index
    %21 = vector.load %arg8[%c0_11, %c0_12] : memref<1x32xf32, #tpu.memory_space<vmem>>, vector<1x32xf32>
    %22 = vector.broadcast %21 : vector<1x32xf32> to vector<8x32xf32>
    %23 = arith.addf %20, %22 : vector<8x32xf32>
    %c0_13 = arith.constant 0 : index
    %c0_14 = arith.constant 0 : index
    %c0_15 = arith.constant 0 : index
    %24 = vector.load %arg4[%c0_13, %c0_14, %c0_15] : memref<9x32x32xbf16, #tpu.memory_space<vmem>>, vector<1x32x32xbf16>
    %25 = vector.shape_cast %24 : vector<1x32x32xbf16> to vector<32x32xbf16>
    %cst_16 = arith.constant dense<0.000000e+00> : vector<8x32xf32>
    %26 = tpu.matmul %0, %25, %cst_16 {dimension_numbers = #tpu.dot_dimension_numbers<[1], [0], [0], [1], [0, 0, 1, 1], [], []>} : vector<8x32xbf16>, vector<32x32xbf16>, vector<8x32xf32> -> vector<8x32xf32>
    %c0_17 = arith.constant 0 : index
    %c0_18 = arith.constant 0 : index
    %c0_19 = arith.constant 0 : index
    %27 = vector.load %arg5[%c0_17, %c0_18, %c0_19] : memref<6x1x32xf32, #tpu.memory_space<vmem>>, vector<1x1x32xf32>
    %28 = vector.shape_cast %27 : vector<1x1x32xf32> to vector<1x32xf32>
    %29 = vector.broadcast %28 : vector<1x32xf32> to vector<8x32xf32>
    %30 = arith.addf %26, %29 : vector<8x32xf32>
    %cst_20 = arith.constant 0.000000e+00 : f32
    %31 = vector.broadcast %cst_20 : f32 to vector<8x32xf32>
    %32 = arith.maximumf %30, %31 : vector<8x32xf32>
    %c1 = arith.constant 1 : index
    %c0_21 = arith.constant 0 : index
    %c0_22 = arith.constant 0 : index
    %33 = vector.load %arg4[%c1, %c0_21, %c0_22] : memref<9x32x32xbf16, #tpu.memory_space<vmem>>, vector<1x32x32xbf16>
    %34 = vector.shape_cast %33 : vector<1x32x32xbf16> to vector<32x32xbf16>
    %35 = arith.truncf %32 : vector<8x32xf32> to vector<8x32xbf16>
    %cst_23 = arith.constant dense<0.000000e+00> : vector<8x32xf32>
    %36 = tpu.matmul %35, %34, %cst_23 {dimension_numbers = #tpu.dot_dimension_numbers<[1], [0], [0], [1], [0, 0, 1, 1], [], []>} : vector<8x32xbf16>, vector<32x32xbf16>, vector<8x32xf32> -> vector<8x32xf32>
    %c1_24 = arith.constant 1 : index
    %c0_25 = arith.constant 0 : index
    %c0_26 = arith.constant 0 : index
    %37 = vector.load %arg5[%c1_24, %c0_25, %c0_26] : memref<6x1x32xf32, #tpu.memory_space<vmem>>, vector<1x1x32xf32>
    %38 = vector.shape_cast %37 : vector<1x1x32xf32> to vector<1x32xf32>
    %39 = vector.broadcast %38 : vector<1x32xf32> to vector<8x32xf32>
    %40 = arith.addf %36, %39 : vector<8x32xf32>
    %cst_27 = arith.constant 0.000000e+00 : f32
    %41 = vector.broadcast %cst_27 : f32 to vector<8x32xf32>
    %42 = arith.maximumf %40, %41 : vector<8x32xf32>
    %c2 = arith.constant 2 : index
    %c0_28 = arith.constant 0 : index
    %c0_29 = arith.constant 0 : index
    %43 = vector.load %arg4[%c2, %c0_28, %c0_29] : memref<9x32x32xbf16, #tpu.memory_space<vmem>>, vector<1x32x32xbf16>
    %44 = vector.shape_cast %43 : vector<1x32x32xbf16> to vector<32x32xbf16>
    %45 = arith.truncf %42 : vector<8x32xf32> to vector<8x32xbf16>
    %cst_30 = arith.constant dense<0.000000e+00> : vector<8x32xf32>
    %46 = tpu.matmul %45, %44, %cst_30 {dimension_numbers = #tpu.dot_dimension_numbers<[1], [0], [0], [1], [0, 0, 1, 1], [], []>} : vector<8x32xbf16>, vector<32x32xbf16>, vector<8x32xf32> -> vector<8x32xf32>
    %c2_31 = arith.constant 2 : index
    %c0_32 = arith.constant 0 : index
    %c0_33 = arith.constant 0 : index
    %47 = vector.load %arg5[%c2_31, %c0_32, %c0_33] : memref<6x1x32xf32, #tpu.memory_space<vmem>>, vector<1x1x32xf32>
    %48 = vector.shape_cast %47 : vector<1x1x32xf32> to vector<1x32xf32>
    %49 = vector.broadcast %48 : vector<1x32xf32> to vector<8x32xf32>
    %50 = arith.addf %46, %49 : vector<8x32xf32>
    %51 = arith.addf %50, %32 : vector<8x32xf32>
    %cst_34 = arith.constant 0.000000e+00 : f32
    %52 = vector.broadcast %cst_34 : f32 to vector<8x32xf32>
    %53 = arith.maximumf %51, %52 : vector<8x32xf32>
    %c3 = arith.constant 3 : index
    %c0_35 = arith.constant 0 : index
    %c0_36 = arith.constant 0 : index
    %54 = vector.load %arg4[%c3, %c0_35, %c0_36] : memref<9x32x32xbf16, #tpu.memory_space<vmem>>, vector<1x32x32xbf16>
    %55 = vector.shape_cast %54 : vector<1x32x32xbf16> to vector<32x32xbf16>
    %56 = arith.truncf %53 : vector<8x32xf32> to vector<8x32xbf16>
    %cst_37 = arith.constant dense<0.000000e+00> : vector<8x32xf32>
    %57 = tpu.matmul %56, %55, %cst_37 {dimension_numbers = #tpu.dot_dimension_numbers<[1], [0], [0], [1], [0, 0, 1, 1], [], []>} : vector<8x32xbf16>, vector<32x32xbf16>, vector<8x32xf32> -> vector<8x32xf32>
    %c3_38 = arith.constant 3 : index
    %c0_39 = arith.constant 0 : index
    %c0_40 = arith.constant 0 : index
    %58 = vector.load %arg5[%c3_38, %c0_39, %c0_40] : memref<6x1x32xf32, #tpu.memory_space<vmem>>, vector<1x1x32xf32>
    %59 = vector.shape_cast %58 : vector<1x1x32xf32> to vector<1x32xf32>
    %60 = vector.broadcast %59 : vector<1x32xf32> to vector<8x32xf32>
    %61 = arith.addf %57, %60 : vector<8x32xf32>
    %cst_41 = arith.constant 0.000000e+00 : f32
    %62 = vector.broadcast %cst_41 : f32 to vector<8x32xf32>
    %63 = arith.maximumf %61, %62 : vector<8x32xf32>
    %c4 = arith.constant 4 : index
    %c0_42 = arith.constant 0 : index
    %c0_43 = arith.constant 0 : index
    %64 = vector.load %arg4[%c4, %c0_42, %c0_43] : memref<9x32x32xbf16, #tpu.memory_space<vmem>>, vector<1x32x32xbf16>
    %65 = vector.shape_cast %64 : vector<1x32x32xbf16> to vector<32x32xbf16>
    %66 = arith.truncf %63 : vector<8x32xf32> to vector<8x32xbf16>
    %cst_44 = arith.constant dense<0.000000e+00> : vector<8x32xf32>
    %67 = tpu.matmul %66, %65, %cst_44 {dimension_numbers = #tpu.dot_dimension_numbers<[1], [0], [0], [1], [0, 0, 1, 1], [], []>} : vector<8x32xbf16>, vector<32x32xbf16>, vector<8x32xf32> -> vector<8x32xf32>
    %c4_45 = arith.constant 4 : index
    %c0_46 = arith.constant 0 : index
    %c0_47 = arith.constant 0 : index
    %68 = vector.load %arg5[%c4_45, %c0_46, %c0_47] : memref<6x1x32xf32, #tpu.memory_space<vmem>>, vector<1x1x32xf32>
    %69 = vector.shape_cast %68 : vector<1x1x32xf32> to vector<1x32xf32>
    %70 = vector.broadcast %69 : vector<1x32xf32> to vector<8x32xf32>
    %71 = arith.addf %67, %70 : vector<8x32xf32>
    %72 = arith.addf %71, %53 : vector<8x32xf32>
    %cst_48 = arith.constant 0.000000e+00 : f32
    %73 = vector.broadcast %cst_48 : f32 to vector<8x32xf32>
    %74 = arith.maximumf %72, %73 : vector<8x32xf32>
    %75 = arith.mulf %12, %74 : vector<8x32xf32>
    %c5 = arith.constant 5 : index
    %c0_49 = arith.constant 0 : index
    %c0_50 = arith.constant 0 : index
    %76 = vector.load %arg4[%c5, %c0_49, %c0_50] : memref<9x32x32xbf16, #tpu.memory_space<vmem>>, vector<1x32x32xbf16>
    %77 = vector.shape_cast %76 : vector<1x32x32xbf16> to vector<32x32xbf16>
    %78 = arith.truncf %75 : vector<8x32xf32> to vector<8x32xbf16>
    %cst_51 = arith.constant dense<0.000000e+00> : vector<8x32xf32>
    %79 = tpu.matmul %78, %77, %cst_51 {dimension_numbers = #tpu.dot_dimension_numbers<[1], [0], [0], [1], [0, 0, 1, 1], [], []>} : vector<8x32xbf16>, vector<32x32xbf16>, vector<8x32xf32> -> vector<8x32xf32>
    %c5_52 = arith.constant 5 : index
    %c0_53 = arith.constant 0 : index
    %c0_54 = arith.constant 0 : index
    %80 = vector.load %arg5[%c5_52, %c0_53, %c0_54] : memref<6x1x32xf32, #tpu.memory_space<vmem>>, vector<1x1x32xf32>
    %81 = vector.shape_cast %80 : vector<1x1x32xf32> to vector<1x32xf32>
    %82 = vector.broadcast %81 : vector<1x32xf32> to vector<8x32xf32>
    %83 = arith.addf %79, %82 : vector<8x32xf32>
    %c0_55 = arith.constant 0 : index
    %c0_56 = arith.constant 0 : index
    %84 = vector.load %arg3[%c0_55, %c0_56] : memref<8x32xi32, #tpu.memory_space<vmem>>, vector<8x32xi32>
    %c0_i32 = arith.constant 0 : i32
    %85 = vector.broadcast %c0_i32 : i32 to vector<8x32xi32>
    %86 = arith.cmpi ne, %84, %85 : vector<8x32xi32>
    %cst_57 = arith.constant -1.000000e+09 : f32
    %87 = vector.broadcast %cst_57 : f32 to vector<8x32xf32>
    %88 = arith.select %86, %83, %87 : vector<8x32xi1>, vector<8x32xf32>
    %89 = tpu.iota {dimensions = array<i32: 1>} : vector<8x32xi32>
    %c0_58 = arith.constant 0 : index
    %c0_59 = arith.constant 0 : index
    %90 = vector.load %arg0[%c0_58, %c0_59] : memref<8x32xf32, #tpu.memory_space<vmem>>, vector<8x32xf32>
    %91 = arith.addf %88, %90 : vector<8x32xf32>
    %92 = tpu.bitcast %91 : vector<8x32xf32> -> vector<8x32xi32>
    %c31_i32 = arith.constant 31 : i32
    %93 = vector.broadcast %c31_i32 : i32 to vector<8x32xi32>
    %94 = arith.shrsi %92, %93 : vector<8x32xi32>
    %c2147483647_i32 = arith.constant 2147483647 : i32
    %95 = vector.broadcast %c2147483647_i32 : i32 to vector<8x32xi32>
    %96 = arith.andi %94, %95 : vector<8x32xi32>
    %97 = arith.xori %92, %96 : vector<8x32xi32>
    %c-32_i32 = arith.constant -32 : i32
    %98 = vector.broadcast %c-32_i32 : i32 to vector<8x32xi32>
    %99 = arith.andi %97, %98 : vector<8x32xi32>
    %c31_i32_60 = arith.constant 31 : i32
    %100 = vector.broadcast %c31_i32_60 : i32 to vector<8x32xi32>
    %101 = arith.subi %100, %89 : vector<8x32xi32>
    %102 = arith.ori %99, %101 : vector<8x32xi32>
    %cst_61 = arith.constant dense<-2147483648> : vector<8xi32>
    %103 = vector.multi_reduction <maxsi>, %102, %cst_61 [1] : vector<8x32xi32> to vector<8xi32>
    %104 = vector.shape_cast %103 : vector<8xi32> to vector<8x1xi32>
    %c31_i32_62 = arith.constant 31 : i32
    %105 = vector.broadcast %c31_i32_62 : i32 to vector<8x1xi32>
    %106 = arith.andi %104, %105 : vector<8x1xi32>
    %c31_i32_63 = arith.constant 31 : i32
    %107 = vector.broadcast %c31_i32_63 : i32 to vector<8x1xi32>
    %108 = arith.subi %107, %106 : vector<8x1xi32>
    %109 = vector.broadcast %108 : vector<8x1xi32> to vector<8x32xi32>
    %110 = arith.cmpi eq, %89, %109 : vector<8x32xi32>
    %111 = arith.extui %110 : vector<8x32xi1> to vector<8x32xi32>
    %112 = arith.sitofp %111 : vector<8x32xi32> to vector<8x32xf32>
    %113 = arith.truncf %112 : vector<8x32xf32> to vector<8x32xbf16>
    %c6 = arith.constant 6 : index
    %c0_64 = arith.constant 0 : index
    %c0_65 = arith.constant 0 : index
    %114 = vector.load %arg4[%c6, %c0_64, %c0_65] : memref<9x32x32xbf16, #tpu.memory_space<vmem>>, vector<1x32x32xbf16>
    %115 = vector.shape_cast %114 : vector<1x32x32xbf16> to vector<32x32xbf16>
    %cst_66 = arith.constant dense<0.000000e+00> : vector<8x32xf32>
    %116 = tpu.matmul %113, %115, %cst_66 {dimension_numbers = #tpu.dot_dimension_numbers<[1], [0], [0], [1], [0, 0, 1, 1], [], []>} : vector<8x32xbf16>, vector<32x32xbf16>, vector<8x32xf32> -> vector<8x32xf32>
    %117 = arith.mulf %13, %116 : vector<8x32xf32>
    %c7 = arith.constant 7 : index
    %c0_67 = arith.constant 0 : index
    %c0_68 = arith.constant 0 : index
    %118 = vector.load %arg4[%c7, %c0_67, %c0_68] : memref<9x32x32xbf16, #tpu.memory_space<vmem>>, vector<1x32x32xbf16>
    %119 = vector.shape_cast %118 : vector<1x32x32xbf16> to vector<32x32xbf16>
    %120 = arith.truncf %117 : vector<8x32xf32> to vector<8x32xbf16>
    %cst_69 = arith.constant dense<0.000000e+00> : vector<8x32xf32>
    %121 = tpu.matmul %120, %119, %cst_69 {dimension_numbers = #tpu.dot_dimension_numbers<[1], [0], [0], [1], [0, 0, 1, 1], [], []>} : vector<8x32xbf16>, vector<32x32xbf16>, vector<8x32xf32> -> vector<8x32xf32>
    %122 = arith.addf %121, %23 : vector<8x32xf32>
    %123 = arith.sitofp %108 : vector<8x1xi32> to vector<8x1xf32>
    %124 = vector.shape_cast %123 : vector<8x1xf32> to vector<8x1xf32>
    %125 = vector.broadcast %124 : vector<8x1xf32> to vector<8x64xf32>
    %126 = tpu.concatenate %88, %122, %125 in 1 : vector<8x32xf32>, vector<8x32xf32>, vector<8x64xf32> -> vector<8x128xf32>
    %c0_70 = arith.constant 0 : index
    %c0_71 = arith.constant 0 : index
    %127 = vector.load %arg9[%c0_70, %c0_71] : memref<8x128xf32, #tpu.memory_space<vmem>>, vector<8x128xf32>
    tpu.vector_store %arg9[%c0_70, %c0_71], %126 {strides = array<i32>} : memref<8x128xf32, #tpu.memory_space<vmem>>, vector<8x128xf32>,
    return
  }
}

</mosaic_0001>

<bundles_post_ra>
// kernel: action_type_head_forward.1
= control target key start
LH: loop header
LB: loop body
LE: loop exit
PB: predicated region body
PF: predicated region fallthrough
CT: control target
= control target key end

     0   :  { %14 = vsyncpa [#allocation3], 0  ;;  %s999_s30 = smov [#allocation2]   ;;  %s1174_s0 = inlined_call_operand.vmem [shape: f32[8,32], index: 0, kind: input, shape index: {}]   ;;  %s1175_s1 = inlined_call_operand.vmem [shape: bf16[8,32], index: 1, kind: input, shape index: {}]   ;;  %s1176_s2 = inlined_call_operand.vmem [shape: bf16[8,16], index: 2, kind: input, shape index: {}]   ;;  %s1177_s3 = inlined_call_operand.vmem [shape: s32[8,32], index: 3, kind: input, shape index: {}]   ;;  %s1178_s4 = inlined_call_operand.hbm [shape: bf16[9,32,32], index: 4, kind: input, shape index: {}]   ;;  %s1179_s5 = inlined_call_operand.vmem [shape: f32[6,1,32], index: 5, kind: input, shape index: {}]   ;;  %s1180_s6 = inlined_call_operand.vmem [shape: bf16[16,96], index: 6, kind: input, shape index: {}]   ;;  %s1181_s7 = inlined_call_operand.vmem [shape: f32[1,96], index: 7, kind: input, shape index: {}]   ;;  %s1182_s8 = inlined_call_operand.vmem [shape: f32[1,32], index: 8, kind: input, shape index: {}]   ;;  %s1183_s9 = inlined_call_operand.vmem [shape: f32[8,128], index: 9, kind: output, shape index: {}]  }
   0x1   :  { %s28_s10 = sshll.u32 %s999_s30, 4  ;;  %s975_s13 = scalar_lea.hbm %s1178_s4, 2304  ;;  %s29_s10 = int_to_ptr.vmem [resolvable:$true] %s28_s10 }
   0x2   :  { %p976_p0 = scmp.ne.s32.totalorder %s1178_s4, %s975_s13  ;;  %p979_p1 = scmp.lt.u32.totalorder %s975_s13, %s1178_s4 }
   0x4   :  { %p981_p2 = pnand %p979_p1, %p976_p0 }
   0x6   :  { %984 = shalt.err (!%p981_p2)
}
   0x7   :  { %s985_s18 = scalar_lea.vmem %s29_s10, 2304  ;;  %p990_p4 = scmp.lt.s32.totalorder %s29_s10, %s29_s10 }
   0x8   :  { %p986_p3 = scmp.ne.s32.totalorder %s29_s10, %s985_s18  ;;  %p991_p5 = scmp.lt.s32.totalorder %s985_s18, %s985_s18 }
   0xa   :  { %p992_p6 = por %p991_p5, %p990_p4 }
   0xc   :  { %p993_p7 = pnand %p992_p6, %p986_p3 }
   0xe   :  { %996 = shalt.err (!%p993_p7)
}
   0xf   :  { %s1000_s19 = smov 64   ;;  %s1001_s20 = smov 4  }
  0x10   :  { %34 = dma.hbm_to_vmem [thread:$0]  %s1178_s4, 2304, %s29_s10, [#allocation3], %s1000_s19, %s1000_s19, %s1001_s20  }
  0x11   :  { %997 = dma.done.wait [#allocation3], 2304  }
  0x12   :  { %998 = vsyncadd [#allocation3], 4294964992  ;;  %v1002_v0 = vmov 0.0   ;;  %vm1003_vm0 = vmmov 0   ;;  %v952_v1 = vld [vmem:[%s1180_s6] sm:$0xff]   ;;  %vm64_vm1 = vcmask 130048  }
  0x13   :  { %862 = vmatprep.subr.bf16.mxu0 %v1002_v0  ;;  %864 = vmatprep.mubr.msk.bf16.mxu0 %vm1003_vm0, %v1002_v0  ;;  %v48_v2 = vld [vmem:[%s1176_s2] sm:$0xf]  ;;  %vm148_vm2 = vcmask 261120   ;;  %v954_v6 = vld [vmem:[#allocation2 + $0x8] sm:$0xff]   ;;  %v957_v29 = vld [vmem:[#allocation2 + $0x10] sm:$0xff]   ;;  %vm781_vm6 = vcmask 523264  }
  0x14   :  { %868 = vmatprep.subr.bf16.mxu1 %v1002_v0  ;;  %872 = vmatprep.mubr.msk.bf16.mxu1 %vm1003_vm0, %v1002_v0  ;;  %v47_v3 = vld [vmem:[%s1175_s1] sm:$0xf]  ;;  %v956_v8 = vld [vmem:[#allocation2 + $0x88] sm:$0xff]   ;;  %v958_v32 = vld [vmem:[#allocation2 + $0x18] sm:$0xff]  }
  0x15   :  { %863 = vmatpush3.bf16.msra.mxu0 %v952_v1  ;;  %v114_v4 = vunpack.c.l.bf16 %v47_v3  ;;  %v953_v5 = vld [vmem:[#allocation2] sm:$0xff]   ;;  %v960_v34 = vld [vmem:[#allocation2 + $0x28] sm:$0xff]   ;;  %v961_v43 = vld [vmem:[#allocation2 + $0x30] sm:$0xff]  }
  0x16   :  { %876 = vmatprep.subr.bf16.mxu0 %v1002_v0  ;;  %v955_v7 = vld [vmem:[#allocation2 + $0x80] sm:$0xff]   ;;  %v962_v44 = vld [vmem:[#allocation2 + $0x38] sm:$0xff]   ;;  %v964_v55 = vld [vmem:[#allocation2 + $0x48] sm:$0xff]  }
  0x17   :  { %116 = vrot.lane.b32.xlu0 %v114_v4, %s1000_s19  ;;  %869 = vmatpush3.bf16.msra.mxu1 %v955_v7  ;;  %v789_v9 = vld [vmem:[%s1181_s7] ss:$0 sm:$0xff]  ;;  %v802_v35 = vld [vmem:[%s1179_s5 + $0x1] ss:$0 sm:$0xff]  ;;  %v807_v46 = vld [vmem:[%s1179_s5 + $0x2] ss:$0 sm:$0xff] }
  0x18   :  { %865 = vmatmul.mubr.msk.bf16.vlgmr.msra.gmra.mrb[0].mxu0 %vm64_vm1, %v48_v2  ;;  %870 = vmatprep.subr.bf16.mxu1 %v1002_v0  ;;  %v959_v24 = vld [vmem:[#allocation2 + $0x20] sm:$0xff]   ;;  %v965_v1 = vld [vmem:[#allocation2 + $0x50] sm:$0xff]   ;;  %v966_v2 = vld [vmem:[#allocation2 + $0x58] sm:$0xff]  }
  0x19   :  { %877 = vmatpush3.bf16.msra.mxu0 %v953_v5  ;;  %880 = vmatprep.mubr.msk.bf16.mxu0 %vm1003_vm0, %v1002_v0  ;;  %v797_v27 = vld [vmem:[%s1179_s5] ss:$0 sm:$0xff]  ;;  %v812_v56 = vld [vmem:[%s1179_s5 + $0x3] ss:$0 sm:$0xff] }
  0x1a   :  { %878 = vmatprep.subr.bf16.mxu0 %v1002_v0  ;;  %v963_v45 = vld [vmem:[#allocation2 + $0x40] sm:$0xff]  }
  0x1b   :  { %871 = vmatpush3.bf16.msra.mxu1 %v956_v8 }
  0x1c   :  { %884 = vmatprep.subr.bf16.mxu1 %v1002_v0 }
  0x1d   :  { %879 = vmatpush3.bf16.msra.mxu0 %v954_v6 }
  0x1e   :  { %892 = vmatprep.subr.bf16.mxu0 %v1002_v0 }
  0x20   :  { %881 = vmatmul.mubr.msk.bf16.vlgmr.msra.gmra.mrb[4].mxu0 %vm148_vm2, %v47_v3  ;;  %v817_v3 = vld [vmem:[%s1179_s5 + $0x4] ss:$0 sm:$0xff] }
  0x21   :  { %896 = vmatprep.mubr.msk.bf16.mxu0 %vm1003_vm0, %v1002_v0  ;;  %893 = vmatpush3.bf16.msra.mxu0 %v959_v24 }
  0x22   :  { %894 = vmatprep.subr.bf16.mxu0 %v1002_v0 }
  0x25   :  { %895 = vmatpush3.bf16.msra.mxu0 %v960_v34 }
  0x26   :  { %908 = vmatprep.subr.bf16.mxu0 %v1002_v0 }
  0x89   :  { %v117_v22 = vpop.permute.xlu0 %116 }
  0xeb   :  { %v102_v10 = vpop.f32.mrb[0].mxu0 }
  0xec   :  { %v103_v11 = vadd.f32 %v789_v9, %v102_v10  ;;  %v866_v12 = vpop.f32.mrb[1].mxu0 }
  0xed   :  { %v105_v13 = vpop.f32.mrb[2].mxu0 }
  0xee   :  { %v792_v14 = vmul.f32 -1.442695, %v103_v11  ;;  %v867_v15 = vpop.f32.mrb[3].mxu0  ;;  %v611_v13 = vld [vmem:[%s1177_s3] sm:$0xff]  ;;  %s1005_s3 = smov 96  }
  0xef   :  { %vm612_vm3 = vcmp.ne.s32.totalorder %v611_v13, 0 }
  0xf0   :  { %971 = vpow2.f32 %v792_v14  ;;  %v822_v14 = vld [vmem:[%s1179_s5 + $0x5] ss:$0 sm:$0xff] }
  0xf3   :  { %v252_v16 = vpop.f32.mrb[4].mxu0 }
  0xf4   :  { %v882_v17 = vpop.f32.mrb[5].mxu0  ;;  %v253_v28 = vadd.f32 %v797_v27, %v252_v16 }
  0xf5   :  { %v255_v18 = vpop.f32.mrb[6].mxu0  ;;  %v616_v17 = vld [vmem:[%s1174_s0] sm:$0xff]  ;;  %s1004_s0 = smov 32  }
  0xf6   :  { %v883_v19 = vpop.f32.mrb[7].mxu0  ;;  %v258_v31 = vmax.f32 %v253_v28, 0.0 }
  0xf8   :  { %v264_v33 = vpack.c.bf16 %v258_v31, %v258_v31 }
  0xfa   :  { %v972_v20 = vpop.eup %971 }
  0xfb   :  { %v111_v21 = vadd.f32 1.0, %v972_v20  ;;  %v614_v20 = vlaneseq }
  0xfd   :  { %973 = vrcp.f32 %v111_v21 }
 0x107   :  { %v1099_v23 = vpop.eup %973 }
 0x108   :  { %v119_v25 = vmul.f32 %v1099_v23, %v117_v22 }
 0x10a   :  { %v125_v26 = vpack.c.bf16 %v119_v25, %v119_v25 }
 0x10c   :  { %134 = vrot.lane.b32.xlu0 %v125_v26, %s1000_s19  ;;  %v615_v26 = vand.u32 127, %v614_v20 }
 0x17e   :  { %v135_v30 = vpop.permute.xlu0 %134 }
 0x17f   :  { %873 = vmatmul.mubr.msk.bf16.vlgmr.msra.gmra.mrb[0].mxu1 %vm148_vm2, %v135_v30 }
 0x180   :  { %885 = vmatpush3.bf16.msra.mxu1 %v957_v29  ;;  %888 = vmatprep.mubr.msk.bf16.mxu1 %vm1003_vm0, %v1002_v0  ;;  %v623_v29 = vsub.s32 31, %v615_v26 }
 0x181   :  { %886 = vmatprep.subr.bf16.mxu1 %v1002_v0 }
 0x184   :  { %887 = vmatpush3.bf16.msra.mxu1 %v958_v32 }
 0x185   :  { %900 = vmatprep.subr.bf16.mxu1 %v1002_v0 }
 0x187   :  { %889 = vmatmul.mubr.msk.bf16.vlgmr.msra.gmra.mrb[4].mxu1 %vm148_vm2, %v264_v33 }
 0x188   :  { %904 = vmatprep.mubr.msk.bf16.mxu1 %vm1003_vm0, %v1002_v0  ;;  %901 = vmatpush3.bf16.msra.mxu1 %v961_v43 }
 0x189   :  { %902 = vmatprep.subr.bf16.mxu1 %v1002_v0 }
 0x18c   :  { %903 = vmatpush3.bf16.msra.mxu1 %v962_v44 }
 0x18d   :  { %916 = vmatprep.subr.bf16.mxu1 %v1002_v0 }
 0x25a   :  { %v322_v36 = vpop.f32.mrb[4].mxu1 }
 0x25b   :  { %v323_v37 = vadd.f32 %v802_v35, %v322_v36  ;;  %v890_v38 = vpop.f32.mrb[5].mxu1 }
 0x25c   :  { %v325_v39 = vpop.f32.mrb[6].mxu1 }
 0x25d   :  { %v328_v40 = vmax.f32 %v323_v37, 0.0  ;;  %v891_v41 = vpop.f32.mrb[7].mxu1  ;;  %v967_v39 = vld [vmem:[#allocation2 + $0x60] sm:$0xff]  }
 0x25f   :  { %v334_v42 = vpack.c.bf16 %v328_v40, %v328_v40  ;;  %v968_v40 = vld [vmem:[#allocation2 + $0x68] sm:$0xff]  }
 0x261   :  { %897 = vmatmul.mubr.msk.bf16.vlgmr.msra.gmra.mrb[8].mxu0 %vm148_vm2, %v334_v42 }
 0x262   :  { %912 = vmatprep.mubr.msk.bf16.mxu0 %vm1003_vm0, %v1002_v0  ;;  %909 = vmatpush3.bf16.msra.mxu0 %v963_v45 }
 0x263   :  { %910 = vmatprep.subr.bf16.mxu0 %v1002_v0 }
 0x266   :  { %911 = vmatpush3.bf16.msra.mxu0 %v964_v55 }
 0x267   :  { %924 = vmatprep.subr.bf16.mxu0 %v1002_v0 }
 0x334   :  { %v392_v47 = vpop.f32.mrb[8].mxu0 }
 0x335   :  { %v393_v48 = vadd.f32 %v807_v46, %v392_v47  ;;  %v898_v49 = vpop.f32.mrb[9].mxu0 }
 0x336   :  { %v395_v50 = vpop.f32.mrb[10].mxu0 }
 0x337   :  { %v398_v51 = vadd.f32 %v393_v48, %v258_v31  ;;  %v899_v52 = vpop.f32.mrb[11].mxu0  ;;  %v969_v50 = vld [vmem:[#allocation2 + $0x70] sm:$0xff]  }
 0x339   :  { %v399_v53 = vmax.f32 %v398_v51, 0.0  ;;  %v970_v51 = vld [vmem:[#allocation2 + $0x78] sm:$0xff]  }
 0x33b   :  { %v405_v54 = vpack.c.bf16 %v399_v53, %v399_v53 }
 0x33d   :  { %905 = vmatmul.mubr.msk.bf16.vlgmr.msra.gmra.mrb[8].mxu1 %vm148_vm2, %v405_v54 }
 0x33e   :  { %920 = vmatprep.mubr.msk.bf16.mxu1 %vm1003_vm0, %v1002_v0  ;;  %917 = vmatpush3.bf16.msra.mxu1 %v965_v1 }
 0x33f   :  { %918 = vmatprep.subr.bf16.mxu1 %v1002_v0 }
 0x342   :  { %919 = vmatpush3.bf16.msra.mxu1 %v966_v2 }
 0x343   :  { %932 = vmatprep.subr.bf16.mxu1 %v1002_v0 }
 0x410   :  { %v463_v57 = vpop.f32.mrb[8].mxu1 }
 0x411   :  { %v464_v58 = vadd.f32 %v812_v56, %v463_v57  ;;  %v906_v59 = vpop.f32.mrb[9].mxu1 }
 0x412   :  { %v466_v60 = vpop.f32.mrb[10].mxu1 }
 0x413   :  { %v469_v61 = vmax.f32 %v464_v58, 0.0  ;;  %v907_v62 = vpop.f32.mrb[11].mxu1 }
 0x415   :  { %v475_v63 = vpack.c.bf16 %v469_v61, %v469_v61 }
 0x417   :  { %913 = vmatmul.mubr.msk.bf16.vlgmr.msra.gmra.mrb[12].mxu0 %vm148_vm2, %v475_v63 }
 0x418   :  { %928 = vmatprep.mubr.msk.bf16.mxu0 %vm1003_vm0, %v1002_v0  ;;  %925 = vmatpush3.bf16.msra.mxu0 %v967_v39 }
 0x419   :  { %926 = vmatprep.subr.bf16.mxu0 %v1002_v0 }
 0x41c   :  { %927 = vmatpush3.bf16.msra.mxu0 %v968_v40 }
 0x4ea   :  { %v533_v4 = vpop.f32.mrb[12].mxu0 }
 0x4eb   :  { %v534_v5 = vadd.f32 %v817_v3, %v533_v4  ;;  %v914_v6 = vpop.f32.mrb[13].mxu0 }
 0x4ec   :  { %v536_v7 = vpop.f32.mrb[14].mxu0 }
 0x4ed   :  { %v539_v8 = vadd.f32 %v534_v5, %v399_v53  ;;  %v915_v9 = vpop.f32.mrb[15].mxu0 }
 0x4ef   :  { %v540_v10 = vmax.f32 %v539_v8, 0.0 }
 0x4f1   :  { %v541_v11 = vmul.f32 %v1099_v23, %v540_v10 }
 0x4f3   :  { %v547_v12 = vpack.c.bf16 %v541_v11, %v541_v11 }
 0x4f5   :  { %921 = vmatmul.mubr.msk.bf16.vlgmr.msra.gmra.mrb[12].mxu1 %vm148_vm2, %v547_v12 }
 0x4f6   :  { %936 = vmatprep.mubr.msk.bf16.mxu1 %vm1003_vm0, %v1002_v0  ;;  %933 = vmatpush3.bf16.msra.mxu1 %v969_v50 }
 0x4f7   :  { %934 = vmatprep.subr.bf16.mxu1 %v1002_v0 }
 0x4fa   :  { %935 = vmatpush3.bf16.msra.mxu1 %v970_v51 }
 0x5c8   :  { %v605_v15 = vpop.f32.mrb[12].mxu1 }
 0x5c9   :  { %v606_v16 = vadd.f32 %v822_v14, %v605_v15  ;;  %v922_v18 = vpop.f32.mrb[13].mxu1 }
 0x5ca   :  { %v608_v19 = vpop.f32.mrb[14].mxu1 }
 0x5cb   :  { %v1156_v21 = vsel %vm612_vm3, %v606_v16, -1e+09  ;;  %v923_v22 = vpop.f32.mrb[15].mxu1 }
 0x5cc   :  { %v617_v24 = vadd.f32 %v616_v17, %v1156_v21 }
 0x5ce   :  { %v619_v25 = vshra.s32 %v617_v24, 31 }
 0x5d0   :  { %v620_v27 = vand.u32 2147483647, %v619_v25 }
 0x5d2   :  { %v621_v28 = vxor.u32 %v620_v27, %v617_v24 }
 0x5d4   :  { %v622_v30 = vand.u32 4294967264, %v621_v28 }
 0x5d6   :  { %v624_v31 = vor.u32 %v623_v29, %v622_v30 }
 0x5d8   :  { %v625_v32 = vsel %vm148_vm2, %v624_v31, 2147483648 }
 0x5d9   :  { %v627_v33 = vshra.s32 %v625_v32, 16  ;;  %v626_v35 = vand.u32 65535, %v625_v32 }
 0x5db   :  { %v629_v34 = vcvt.s32.f32 %v627_v33  ;;  %v628_v37 = vcvt.s32.f32 %v626_v35 }
 0x5dd   :  { %630 = vmax.xlane.f32.xlu1 %v629_v34 }
 0x66a   :  { %v631_v36 = vpop.xlane.xlu1 %630 }
 0x66b   :  { %vm632_vm4 = vcmp.eq.f32.partialorder %v629_v34, %v631_v36  ;;  %v637_v41 = vcvt.f32.s32 %v631_v36 }
 0x66c   :  { %v633_v38 = vsel %vm632_vm4, %v628_v37, -inf }
 0x66d   :  { %634 = vmax.xlane.f32.xlu1 %v633_v38  ;;  %v638_v43 = vshll.u32 %v637_v41, 16 }
 0x6fa   :  { %v635_v42 = vpop.xlane.xlu1 %634 }
 0x6fb   :  { %v636_v44 = vcvt.f32.s32 %v635_v42 }
 0x6fd   :  { %v639_v45 = vadd.s32 %v638_v43, %v636_v44 }
 0x6ff   :  { %v640_v46 = vand.u32 31, %v639_v45 }
 0x701   :  { %v641_v47 = vsub.s32 31, %v640_v46 }
 0x703   :  { %vm642_vm5 = vcmp.eq.s32.totalorder %v615_v26, %v641_v47  ;;  %v775_v2 = vcvt.s32.f32 %v641_v47 }
 0x704   :  { %v826_v48 = vsel %vm642_vm5, 1.0, %v1002_v0  ;;  %v793_v0 = vld [vmem:[%s1182_s8] ss:$0 sm:$0xff] }
 0x705   :  { %v645_v49 = vpack.c.bf16 %v826_v48, %v826_v48 }
 0x707   :  { %929 = vmatmul.mubr.msk.bf16.vlgmr.msra.gmra.mrb[16].mxu0 %vm148_vm2, %v645_v49 }
 0x7da   :  { %v700_v52 = vpop.f32.mrb[16].mxu0 }
 0x7db   :  { %707 = vrot.lane.b32.xlu0 %v700_v52, %s1004_s0  ;;  %v930_v53 = vpop.f32.mrb[17].mxu0 }
 0x7dc   :  { %v703_v54 = vpop.f32.mrb[18].mxu0 }
 0x7dd   :  { %v931_v55 = vpop.f32.mrb[19].mxu0 }
 0x84d   :  { %v708_v56 = vpop.permute.xlu0 %707 }
 0x84e   :  { %v710_v57 = vmul.f32 %v1099_v23, %v708_v56 }
 0x850   :  { %v716_v58 = vpack.c.bf16 %v710_v57, %v710_v57 }
 0x852   :  { %718 = vrot.lane.b32.xlu1 %v716_v58, %s1005_s3 }
 0x8c4   :  { %v719_v59 = vpop.permute.xlu1 %718 }
 0x8c5   :  { %937 = vmatmul.mubr.msk.bf16.vlgmr.msra.gmra.mrb[0].mxu1 %vm148_vm2, %v719_v59 }
 0x998   :  { %v769_v60 = vpop.f32.mrb[0].mxu1 }
 0x999   :  { %v940_v61 = vadd.f32 %v793_v0, %v769_v60  ;;  %v938_v62 = vpop.f32.mrb[1].mxu1 }
 0x99a   :  { %v772_v63 = vpop.f32.mrb[2].mxu1 }
 0x99b   :  { %777 = vrot.lane.b32.xlu0 %v940_v61, %s1004_s0  ;;  %v939_v1 = vpop.f32.mrb[3].mxu1 }
 0xa0d   :  { %v778_v3 = vpop.permute.xlu0 %777 }
 0xa0e   :  { %v780_v23 = vsel %vm148_vm2, %v1156_v21, %v778_v3 }
 0xa0f   :  { %v782_v4 = vsel %vm781_vm6, %v780_v23, %v775_v2 }
 0xa10   :  { %783 = vst [vmem:[%s1183_s9] sm:$0xff] %v782_v4 }
 0xa11   :  { %788 = vsyncpa [#allocation3], 1 }

</bundles_post_ra>
